<compile_context>
chip_gen: v6e
topology: v6e:2x2x1
jax: 0.10.0
libtpu: 0.0.40
codegen_flags: <defaults>
</compile_context>

<pallas_src>
import jax
import jax.numpy as jnp
from jax import lax
from jax.experimental import pallas as pl
from jax.experimental.pallas import tpu as pltpu


def _make_masked_mse_kernel(C: int, t_tile: int, acc_rows: int):
    """Builds the kernel for grid (B, T_pad // t_tile); accumulates per-sample SSE."""

    def fold(d2):
        # Optionally fold sublane groups so the accumulator RMW touches fewer
        # vregs (only when C is a multiple of 8 and larger than 8).
        if acc_rows != C:
            return d2.reshape(C // acc_rows, acc_rows, t_tile).sum(axis=0)
        return d2

    def kernel(nf_ref, invd_ref, lt_ref, pred_ref, true_ref, out_ref, acc_ref):
        b = pl.program_id(0)      # batch sample ("parallel" axis)
        t = pl.program_id(1)      # time tile   ("arbitrary" / reduction axis)

        @pl.when(t == 0)
        def _():
            acc_ref[...] = jnp.zeros_like(acc_ref)

        f = nf_ref[b]             # valid frames for this sample (clamped to T)
        tile_start = t * t_tile
        tile_end = tile_start + t_tile

        # Fast path: tile fully inside the valid range -> no mask work at all.
        @pl.when(tile_end <= f)
        def _():
            d = pred_ref[0].astype(jnp.float32) - true_ref[0].astype(jnp.float32)
            acc_ref[...] += fold(d * d)

        # Boundary tile: partially valid -> mask with the global column index.
        @pl.when(jnp.logical_and(tile_start < f, f < tile_end))
        def _():
            d = pred_ref[0].astype(jnp.float32) - true_ref[0].astype(jnp.float32)
            col = tile_start + lax.broadcasted_iota(jnp.int32, (C, t_tile), 1)
            d = jnp.where(col < f, d, jnp.float32(0.0))
            acc_ref[...] += fold(d * d)

        # Fully-invalid tiles (tile_start >= f): the clamped index_map repeats the
        # block index so Pallas skips the DMA, and compute is skipped here too.

        @pl.when(t == pl.num_programs(1) - 1)
        def _():
            # Single cross-lane/sublane reduce per sample; scale by 1/(C*f) once
            # here (0 * inf preserves NaN for empty slices). Lane-dense store.
            per_sample = jnp.sum(acc_ref[...]) * invd_ref[b]
            out_ref[...] = jnp.full(out_ref.shape, per_sample, dtype=jnp.float32)

    return kernel


def masked_bm_loss(pred: jax.Array, true: jax.Array, n_frames: jax.Array,
                   *, t_tile: int | None = None) -> jax.Array:
    """pred, true: [B, C, T] (f32 or bf16); n_frames: [B] int. Returns scalar f32."""
    B, C, T = pred.shape
    assert true.shape == pred.shape

    elem_bytes = jnp.dtype(pred.dtype).itemsize
    # Fold a tall accumulator down to 8 sublane rows when possible.
    acc_rows = 8 if (C % 8 == 0 and C > 8) else C

    if t_tile is None:
        # Size tiles so each grid step streams multi-MiB slabs (amortizes the
        # ~0.35us/step grid overhead on this HBM-bound kernel) while the
        # pipelined footprint (2 inputs x 2 buffers + f32 accumulator, with
        # sublane padding) stays around 20 MiB -- inside VMEM on every
        # generation (v5e/v6e 128 MiB, v7x 64 MiB per TC).
        sub = 8 * 4 // elem_bytes                   # sublane pack: 8 f32 / 16 bf16
        c_in_pad = -(-C // sub) * sub               # rows actually resident / input
        acc_pad = -(-acc_rows // 8) * 8             # f32 accumulator sublane pad
        bytes_per_lane = 2 * 2 * c_in_pad * elem_bytes + 4 * acc_pad
        budget = 20 * 1024 * 1024
        max_tile = max(128, (budget // bytes_per_lane) // 128 * 128)
        t_tile = T if T <= max_tile else max_tile

    nf = jnp.minimum(n_frames.astype(jnp.int32), jnp.int32(T))        # clamp to T
    inv_denom = jnp.float32(1.0) / (jnp.float32(C) * nf.astype(jnp.float32))
    # Last time-tile index containing any valid frame (floored at 0 so nf==0
    # samples still map to a legal block; they contribute NaN via 0*inf).
    last_tile = jnp.maximum((nf + (t_tile - 1)) // t_tile - 1, 0).astype(jnp.int32)

    if T % t_tile == 0:
        t_pad = T
    else:
        t_pad = pl.cdiv(T, t_tile) * t_tile
        pad = ((0, 0), (0, 0), (0, t_pad - T))
        pred = jnp.pad(pred, pad)          # padded cols are masked out (col >= f)
        true = jnp.pad(true, pad)
    n_t = t_pad // t_tile

    kernel = _make_masked_mse_kernel(C, t_tile, acc_rows)

    def in_map(b, t, nf_ref, invd_ref, lt_ref):
        # Clamp to the last valid tile: a repeated block index makes Pallas skip
        # the DMA, so fully-masked tail tiles cost zero HBM traffic.
        return (b, 0, jnp.minimum(t, lt_ref[b]))

    out = pl.pallas_call(
        kernel,
        out_shape=jax.ShapeDtypeStruct((B, 8, 128), jnp.float32),
        grid_spec=pltpu.PrefetchScalarGridSpec(
            num_scalar_prefetch=3,
            grid=(B, n_t),
            in_specs=[
                pl.BlockSpec((1, C, t_tile), in_map),
                pl.BlockSpec((1, C, t_tile), in_map),
            ],
            out_specs=pl.BlockSpec((1, 8, 128),
                                   lambda b, t, nf, invd, lt: (b, 0, 0)),
            scratch_shapes=[pltpu.VMEM((acc_rows, t_tile), jnp.float32)],
        ),
        compiler_params=pltpu.CompilerParams(
            dimension_semantics=("parallel", "arbitrary"),
            vmem_limit_bytes=40 * 1024 * 1024,
        ),
    )(nf, inv_denom, last_tile, pred, true)

    # Final mean over per-sample losses is a tiny fused XLA op.
    return jnp.mean(out[:, 0, 0])


def _reference(pred, true, n_frames):
    # Pure-JAX reference matching the PyTorch loop semantics.
    B, C, T = pred.shape
    losses = []
    for i in range(B):
        f = min(int(n_frames[i]), T)
        d = pred[i, :, :f].astype(jnp.float32) - true[i, :, :f].astype(jnp.float32)
        losses.append(jnp.mean(d * d))
    return jnp.mean(jnp.stack(losses))


if __name__ == "__main__":
    key = jax.random.PRNGKey(0)

    # Small shape matching the module's implied layout [B, C, T].
    B, C, T = 2, 4, 16
    k1, k2 = jax.random.split(key)
    pred = jax.random.normal(k1, (B, C, T), dtype=jnp.float32)
    true = jax.random.normal(k2, (B, C, T), dtype=jnp.float32)
    n_frames = jnp.array([10, 16], dtype=jnp.int32)

    out = jax.block_until_ready(masked_bm_loss(pred, true, n_frames))
    ref = _reference(pred, true, n_frames)
    assert jnp.allclose(out, ref, rtol=2e-5, atol=1e-6), (out, ref)

    # Larger shape exercising time tiling, padding, the nf-driven DMA-skip clamp
    # and the fast-path / boundary-tile split.
    B2, C2, T2 = 3, 6, 300
    k3, k4 = jax.random.split(k1)
    pred2 = jax.random.normal(k3, (B2, C2, T2), dtype=jnp.float32)
    true2 = jax.random.normal(k4, (B2, C2, T2), dtype=jnp.float32)
    n_frames2 = jnp.array([300, 137, 64], dtype=jnp.int32)

    out2 = jax.block_until_ready(masked_bm_loss(pred2, true2, n_frames2, t_tile=128))
    ref2 = _reference(pred2, true2, n_frames2)
    assert jnp.allclose(out2, ref2, rtol=2e-5, atol=1e-6), (out2, ref2)

    print("KERNEL_OK")
</pallas_src>

<mosaic_0001>
module attributes {stable_mosaic.version = 11 : i64} {
  func.func @kernel(%arg0: i32, %arg1: i32, %arg2: memref<2xi32, #tpu.memory_space<smem>>, %arg3: memref<2xf32, #tpu.memory_space<smem>>, %arg4: memref<2xi32, #tpu.memory_space<smem>>, %arg5: memref<1x4x16xf32, #tpu.memory_space<vmem>>, %arg6: memref<1x4x16xf32, #tpu.memory_space<vmem>>, %arg7: memref<1x8x128xf32, #tpu.memory_space<vmem>>, %arg8: memref<4x16xf32, #tpu.memory_space<vmem>>) attributes {dimension_semantics = [#tpu.dimension_semantics<parallel>, #tpu.dimension_semantics<arbitrary>], iteration_bounds = array<i64: 2, 1>, scalar_prefetch = 3 : i64, scratch_operands = 1 : i64, tpu.core_type = #tpu.core_type<tc>, window_params = [{transform_indices = @transform_0, window_bounds = array<i64: 1, 4, 16>}, {transform_indices = @transform_1, window_bounds = array<i64: 1, 4, 16>}, {transform_indices = @transform_2, window_bounds = array<i64: 1, 8, 128>}]} {
    %c0_i32 = arith.constant 0 : i32
    %0 = arith.cmpi eq, %arg1, %c0_i32 : i32
    %1 = arith.extui %0 : i1 to i32
    %c0_i32_0 = arith.constant 0 : i32
    %2 = arith.cmpi ne, %1, %c0_i32_0 : i32
    scf.if %2 {
      %cst = arith.constant 0.000000e+00 : f32
      %18 = vector.broadcast %cst : f32 to vector<4x16xf32>
      %c0 = arith.constant 0 : index
      %c0_6 = arith.constant 0 : index
      %19 = vector.load %arg8[%c0, %c0_6] : memref<4x16xf32, #tpu.memory_space<vmem>>, vector<4x16xf32>
      tpu.vector_store %arg8[%c0, %c0_6], %18 {strides = array<i32>} : memref<4x16xf32, #tpu.memory_space<vmem>>, vector<4x16xf32>,
    } else {
    }
    %3 = arith.index_cast %arg0 : i32 to index
    %4 = memref.load %arg2[%3] : memref<2xi32, #tpu.memory_space<smem>>
    %c16_i32 = arith.constant 16 : i32
    %5 = arith.muli %arg1, %c16_i32 : i32
    %c16_i32_1 = arith.constant 16 : i32
    %6 = arith.addi %5, %c16_i32_1 : i32
    %7 = arith.cmpi sle, %6, %4 : i32
    %8 = arith.extui %7 : i1 to i32
    %c0_i32_2 = arith.constant 0 : i32
    %9 = arith.cmpi ne, %8, %c0_i32_2 : i32
    scf.if %9 {
      %c0 = arith.constant 0 : index
      %c0_6 = arith.constant 0 : index
      %c0_7 = arith.constant 0 : index
      %18 = vector.load %arg5[%c0, %c0_6, %c0_7] : memref<1x4x16xf32, #tpu.memory_space<vmem>>, vector<1x4x16xf32>
      %19 = vector.shape_cast %18 : vector<1x4x16xf32> to vector<4x16xf32>
      %c0_8 = arith.constant 0 : index
      %c0_9 = arith.constant 0 : index
      %c0_10 = arith.constant 0 : index
      %20 = vector.load %arg6[%c0_8, %c0_9, %c0_10] : memref<1x4x16xf32, #tpu.memory_space<vmem>>, vector<1x4x16xf32>
      %21 = vector.shape_cast %20 : vector<1x4x16xf32> to vector<4x16xf32>
      %22 = arith.subf %19, %21 : vector<4x16xf32>
      %c0_11 = arith.constant 0 : index
      %c0_12 = arith.constant 0 : index
      %23 = vector.load %arg8[%c0_11, %c0_12] : memref<4x16xf32, #tpu.memory_space<vmem>>, vector<4x16xf32>
      %24 = arith.mulf %22, %22 : vector<4x16xf32>
      %25 = arith.addf %23, %24 : vector<4x16xf32>
      %c0_13 = arith.constant 0 : index
      %c0_14 = arith.constant 0 : index
      %26 = vector.load %arg8[%c0_13, %c0_14] : memref<4x16xf32, #tpu.memory_space<vmem>>, vector<4x16xf32>
      tpu.vector_store %arg8[%c0_13, %c0_14], %25 {strides = array<i32>} : memref<4x16xf32, #tpu.memory_space<vmem>>, vector<4x16xf32>,
    } else {
    }
    %10 = arith.cmpi slt, %5, %4 : i32
    %11 = arith.cmpi slt, %4, %6 : i32
    %12 = arith.andi %10, %11 : i1
    %13 = arith.extui %12 : i1 to i32
    %c0_i32_3 = arith.constant 0 : i32
    %14 = arith.cmpi ne, %13, %c0_i32_3 : i32
    scf.if %14 {
      %c0 = arith.constant 0 : index
      %c0_6 = arith.constant 0 : index
      %c0_7 = arith.constant 0 : index
      %18 = vector.load %arg5[%c0, %c0_6, %c0_7] : memref<1x4x16xf32, #tpu.memory_space<vmem>>, vector<1x4x16xf32>
      %19 = vector.shape_cast %18 : vector<1x4x16xf32> to vector<4x16xf32>
      %c0_8 = arith.constant 0 : index
      %c0_9 = arith.constant 0 : index
      %c0_10 = arith.constant 0 : index
      %20 = vector.load %arg6[%c0_8, %c0_9, %c0_10] : memref<1x4x16xf32, #tpu.memory_space<vmem>>, vector<1x4x16xf32>
      %21 = vector.shape_cast %20 : vector<1x4x16xf32> to vector<4x16xf32>
      %22 = arith.subf %19, %21 : vector<4x16xf32>
      %23 = tpu.iota {dimensions = array<i32: 1>} : vector<4x16xi32>
      %24 = vector.broadcast %5 : i32 to vector<4x16xi32>
      %25 = arith.addi %24, %23 : vector<4x16xi32>
      %26 = vector.broadcast %4 : i32 to vector<4x16xi32>
      %27 = arith.cmpi slt, %25, %26 : vector<4x16xi32>
      %cst = arith.constant 0.000000e+00 : f32
      %28 = vector.broadcast %cst : f32 to vector<4x16xf32>
      %29 = arith.select %27, %22, %28 : vector<4x16xi1>, vector<4x16xf32>
      %c0_11 = arith.constant 0 : index
      %c0_12 = arith.constant 0 : index
      %30 = vector.load %arg8[%c0_11, %c0_12] : memref<4x16xf32, #tpu.memory_space<vmem>>, vector<4x16xf32>
      %31 = arith.mulf %29, %29 : vector<4x16xf32>
      %32 = arith.addf %30, %31 : vector<4x16xf32>
      %c0_13 = arith.constant 0 : index
      %c0_14 = arith.constant 0 : index
      %33 = vector.load %arg8[%c0_13, %c0_14] : memref<4x16xf32, #tpu.memory_space<vmem>>, vector<4x16xf32>
      tpu.vector_store %arg8[%c0_13, %c0_14], %32 {strides = array<i32>} : memref<4x16xf32, #tpu.memory_space<vmem>>, vector<4x16xf32>,
    } else {
    }
    %c0_i32_4 = arith.constant 0 : i32
    %15 = arith.cmpi eq, %arg1, %c0_i32_4 : i32
    %16 = arith.extui %15 : i1 to i32
    %c0_i32_5 = arith.constant 0 : i32
    %17 = arith.cmpi ne, %16, %c0_i32_5 : i32
    scf.if %17 {
      %c0 = arith.constant 0 : index
      %c0_6 = arith.constant 0 : index
      %18 = vector.load %arg8[%c0, %c0_6] : memref<4x16xf32, #tpu.memory_space<vmem>>, vector<4x16xf32>
      %19 = vector.shape_cast %18 : vector<4x16xf32> to vector<1x4x16xf32>
      %cst = arith.constant dense<0.000000e+00> : vector<1xf32>
      %20 = vector.multi_reduction <add>, %19, %cst [1, 2] : vector<1x4x16xf32> to vector<1xf32>
      %21 = vector.shape_cast %20 : vector<1xf32> to vector<1x1x1xf32>
      %22 = vector.extract %21[0, 0, 0] : f32 from vector<1x1x1xf32>
      %23 = arith.index_cast %arg0 : i32 to index
      %24 = memref.load %arg3[%23] : memref<2xf32, #tpu.memory_space<smem>>
      %25 = arith.mulf %22, %24 : f32
      %26 = vector.broadcast %25 : f32 to vector<1x8x128xf32>
      %c0_7 = arith.constant 0 : index
      %c0_8 = arith.constant 0 : index
      %c0_9 = arith.constant 0 : index
      %27 = vector.load %arg7[%c0_7, %c0_8, %c0_9] : memref<1x8x128xf32, #tpu.memory_space<vmem>>, vector<1x8x128xf32>
      tpu.vector_store %arg7[%c0_7, %c0_8, %c0_9], %26 {strides = array<i32>} : memref<1x8x128xf32, #tpu.memory_space<vmem>>, vector<1x8x128xf32>,
    } else {
    }
    return
  }
  func.func @transform_0(%arg0: i32, %arg1: i32, %arg2: memref<2xi32, #tpu.memory_space<smem>>, %arg3: memref<2xf32, #tpu.memory_space<smem>>, %arg4: memref<2xi32, #tpu.memory_space<smem>>) -> (i32, i32, i32) {
    %0 = arith.index_cast %arg0 : i32 to index
    %1 = memref.load %arg4[%0] : memref<2xi32, #tpu.memory_space<smem>>
    %2 = arith.minsi %arg1, %1 : i32
    %c0_i32 = arith.constant 0 : i32
    %c0_i32_0 = arith.constant 0 : i32
    return %arg0, %c0_i32, %2 : i32, i32, i32
  }
  func.func @transform_1(%arg0: i32, %arg1: i32, %arg2: memref<2xi32, #tpu.memory_space<smem>>, %arg3: memref<2xf32, #tpu.memory_space<smem>>, %arg4: memref<2xi32, #tpu.memory_space<smem>>) -> (i32, i32, i32) {
    %0 = arith.index_cast %arg0 : i32 to index
    %1 = memref.load %arg4[%0] : memref<2xi32, #tpu.memory_space<smem>>
    %2 = arith.minsi %arg1, %1 : i32
    %c0_i32 = arith.constant 0 : i32
    %c0_i32_0 = arith.constant 0 : i32
    return %arg0, %c0_i32, %2 : i32, i32, i32
  }
  func.func @transform_2(%arg0: i32, %arg1: i32, %arg2: memref<2xi32, #tpu.memory_space<smem>>, %arg3: memref<2xf32, #tpu.memory_space<smem>>, %arg4: memref<2xi32, #tpu.memory_space<smem>>) -> (i32, i32, i32) {
    %c0_i32 = arith.constant 0 : i32
    %c0_i32_0 = arith.constant 0 : i32
    %c0_i32_1 = arith.constant 0 : i32
    return %arg0, %c0_i32, %c0_i32_0 : i32, i32, i32
  }
}

</mosaic_0001>

<bundles_post_ra>
// kernel: tpu_custom_call.1
= control target key start
LH: loop header
LB: loop body
LE: loop exit
PB: predicated region body
PF: predicated region fallthrough
CT: control target
= control target key end

     0   :  { %s809_s18 = smov [#allocation4]   ;;  %s1172_s0 = inlined_call_operand.hbm [shape: s32[2], index: 0, kind: input, shape index: {}]   ;;  %s1173_s3 = inlined_call_operand.hbm [shape: f32[2,4,16], index: 3, kind: input, shape index: {}]   ;;  %s1174_s4 = inlined_call_operand.hbm [shape: f32[2,4,16], index: 4, kind: input, shape index: {}]   ;;  %s1175_s5 = inlined_call_operand.hbm [shape: f32[2,8,128], index: 5, kind: output, shape index: {}]   ;;  %s1176_s1 = inlined_call_operand.vmem [shape: f32[2], index: 1, kind: input, shape index: {}]   ;;  %s1177_s2 = inlined_call_operand.vmem [shape: s32[2], index: 2, kind: input, shape index: {}]  }
   0x1   :  { %1192 = sst [smem:[#allocation29_spill]] %s1175_s5  ;;  %s12_s23 = sshll.u32 %s1176_s1, 4  ;;  %s13_s23 = int_to_ptr.vmem [resolvable:$true] %s12_s23 }
   0x2   :  { %11 = dma.hbm_to_smem %s1172_s0, 16, %s809_s18, [#allocation3] }
   0x3   :  { %s16_s26 = sshll.u32 %s1177_s2, 4  ;;  %s593_s27 = scalar_lea.vmem %s13_s23, 16  ;;  %s17_s26 = int_to_ptr.vmem [resolvable:$true] %s16_s26 }
   0x4   :  { %p594_p0 = scmp.ne.s32.totalorder %s13_s23, %s593_s27  ;;  %p598_p1 = scmp.lt.s32.totalorder %s13_s23, %s13_s23 }
   0x5   :  { %p599_p2 = scmp.lt.s32.totalorder %s593_s27, %s593_s27 }
   0x7   :  { %p600_p3 = por %p599_p2, %p598_p1 }
   0x9   :  { %p601_p4 = pnand %p600_p3, %p594_p0 }
   0xb   :  { %604 = shalt.err (!%p601_p4)  }
   0xc   :  { %s810_s28 = smov [#allocation5]   ;;  %s605_s0 = scalar_lea.vmem %s17_s26, 16 }
   0xd   :  { %15 = dma.vmem_to_smem %s13_s23, 16, %s810_s28, [#allocation3] }
   0xe   :  { %p606_p5 = scmp.ne.s32.totalorder %s17_s26, %s605_s0  ;;  %p610_p6 = scmp.lt.s32.totalorder %s17_s26, %s17_s26 }
   0xf   :  { %p611_p7 = scmp.lt.s32.totalorder %s605_s0, %s605_s0 }
  0x11   :  { %p612_p8 = por %p611_p7, %p610_p6 }
  0x13   :  { %p613_p9 = pnand %p612_p8, %p606_p5 }
  0x15   :  { %616 = shalt.err (!%p613_p9)  }
  0x16   :  { %s811_s1 = smov [#allocation6]  }
  0x17   :  { %19 = dma.vmem_to_smem %s17_s26, 16, %s811_s1, [#allocation3] }
  0x18   :  { %747 = dma.done.wait [#allocation3], 48 }
  0x19   :  { %748 = vsyncadd [#allocation3], 4294967248 }
  0x1a   :  { %21 = sfence }
  0x1b   :  { %22 = vsyncpa [#allocation8], 0 }
  0x1c   :  { %24 = vsyncpa [#allocation8 + $0x1], 0 }
  0x1d   :  { %25 = vsyncpa [#allocation11], 0 }
  0x1e   :  { %27 = vsyncpa [#allocation11 + $0x1], 0 }
  0x1f   :  { %28 = vsyncpa [#allocation9], 0 }
  0x20   :  { %30 = vsyncpa [#allocation9 + $0x1], 0  ;;  %s855_s2 = smov 0   ;;  %s857_s29 = smov 0  }
  0x21   :  { %s859_s30 = smov 0   ;;  %s861_s6 = smov 0  }
  0x22   :  { %s863_s7 = smov 0   ;;  %s865_s8 = smov 0  }
  0x23   :  { %s867_s9 = smov 0   ;;  %s869_s10 = smov 0  }
  0x24   :  { %s871_s11 = smov 0   ;;  %s873_s12 = smov 0  }
  0x25   :  { %s875_s13 = smov 0   ;;  %s877_s14 = smov 0  }
  0x26 LB: > { %1193 = sst [smem:[#allocation21_spill]] %s763_s2  ;;  %s431_s15 = sadd.s32 4294967295, %s807_s14   ;;  %s807_s14 = sphi %s877_s14, %s36_s14   ;;  %s803_s13 = sphi %s875_s13, %s1241_s13   ;;  %s799_s12 = sphi %s873_s12, %s1240_s12   ;;  %s795_s11 = sphi %s871_s11, %s1231_s11   ;;  %s791_s10 = sphi %s869_s10, %s1239_s10   ;;  %s787_s9 = sphi %s867_s9, %s1238_s9   ;;  %s783_s8 = sphi %s865_s8, %s1237_s8   ;;  %s779_s7 = sphi %s863_s7, %s1236_s7   ;;  %s775_s6 = sphi %s861_s6, %s1235_s6   ;;  %s771_s30 = sphi %s859_s30, %s1229_s30   ;;  %s767_s29 = sphi %s857_s29, %s1234_s29   ;;  %s763_s2 = sphi %s855_s2, %s1233_s2  }
  0x27   : > { %1194 = sst [smem:[#allocation22_spill]] %s771_s30  ;;  %s48_s16 = sadd.s32 1, %s803_s13 }
  0x28   : > { %1195 = sst [smem:[#allocation23_spill]] %s795_s11  ;;  %s432_s18 = sadd.s32 4294967294, %s807_s14  }
  0x29   : > { %s52_s17 = sld [smem:[#allocation6 + %s803_s13]]  ;;  %p50_p10 = scmp.ge.s32.totalorder %s48_s16, 2 }
  0x2a   : > { %s63_s19 = sadd.s32 1, %s795_s11  ;;  %p70_p11 = scmp.ne.s32.totalorder %s795_s11, %s791_s10 }
  0x2b   : > { %s1243_s16 = smov (%p50_p10, %s48_s16), 0  ;;  %p1182_p12 = scmp.eq.s32.totalorder %s807_s14, 0 }
  0x2c   : > { %1196 = sst [smem:[#allocation24_spill]] %s1243_s16  ;;  %p76_p13 = scmp.ne.s32.totalorder %s791_s10, %s787_s9 }
  0x2d   : > { %s55_s20 = sld [smem:[#allocation6 + %s1243_s16]]  ;;  %s927_s21 = ssub.s32 %s803_s13, %s1243_s16 }
  0x2e   : > { %p929_p1 = scmp.eq.s32.totalorder %s431_s15, 0  ;;  %p121_p2 = scmp.eq.s32.totalorder %s927_s21, 0 }
  0x2f   : > { %p433_p0 = scmp.gt.s32.totalorder %s52_s17, 0  ;;  %s123_s23 = sadd.s32 1, %s771_s30 }
  0x30   : > { %s1197_s22 = scalar_select %p929_p1, 1, 0 }
  0x31   : > { %s1245_s17 = smov (%p433_p0, %s52_s17), 0  ;;  %p937_p3 = por %p929_p1, %p76_p13 }
  0x32   : > { %p133_p4 = scmp.ne.s32.totalorder %s771_s30, %s767_s29  ;;  %p134_p6 = scmp.eq.s32.totalorder %s431_s15, 1 }
  0x33   : > { %s1198_s24 = scalar_select %p937_p3, 1, 0 }
  0x34   : > { %s944_s25 = scalar_select %p121_p2, %s771_s30, %s123_s23  }
  0x35   : > { %p434_p5 = scmp.gt.s32.totalorder %s55_s20, 0  ;;  %p139_p7 = scmp.ne.s32.totalorder %s767_s29, %s763_s2 }
  0x36   : > { %1199 = sst [smem:[#allocation25_spill]] %s944_s25  ;;  %p140_p8 = scmp.eq.s32.totalorder %s432_s18, 1 }
  0x37   : > { %s1247_s20 = smov (%p434_p5, %s55_s20), 0  ;;  %p948_p9 = por %p134_p6, %p133_p4 }
  0x38   : > { %p952_p10 = por %p140_p8, %p139_p7  ;;  %s59_s28 = ssub.s32 %s1245_s17, %s1247_s20 }
  0x39   : > { %s1200_s26 = scalar_select %p948_p9, 1, 0 }
  0x3a   : > { %s1202_s27 = scalar_select %p952_p10, 1, 0 }
  0x3b   : > { %1201 = sst [smem:[#allocation26_spill]] %s1200_s26  ;;  %s60_s0 = sor.u32 %s59_s28, %s927_s21 }
  0x3c   : > { %1203 = sst [smem:[#allocation27_spill]] %s1202_s27  ;;  %p72_p0 = por %p1182_p12, %p70_p11 }
  0x3d   : > { %p61_p2 = scmp.eq.s32.totalorder %s60_s0, 0  ;;  %s160_s1 = sand.u32 1, %s795_s11  }
  0x3e   : > { %p1181_p5 = scmp.lt.s32.totalorder %s807_s14, 2  ;;  %s439_s15 = sshll.u32 %s160_s1, 2 }
  0x3f   : > { %s968_s9 = scalar_select %p61_p2, %s795_s11, %s63_s19  }
  0x40   : > { %p972_p4 = pnand %p1181_p5, %p72_p0  ;;  %p445_p11 = scmp.ge.s32.totalorder %s807_s14, 1 }
  0x41   : > { %1204 = sst [smem:[#allocation28_spill]] %s968_s9  ;;  %p202_p6 = scmp.lt.s32.totalorder %s807_s14, 3 }
  0x42   : > { %s458_s17 = scalar_select %p72_p0, [#allocation6], [#allocation13] }
  0x43   : > { %s459_s20 = scalar_select %p72_p0, %s803_s13, 0 }
  0x44   : > { %s1249_s17 = smov (!%p1181_p5, %s458_s17), [#allocation15]  ;;  %s164_s19 = scalar_lea.vmem [#allocation7], %s439_s15 }
  0x45   : > { %s1251_s20 = smov (!%p1181_p5, %s459_s20), 0  ;;  %s175_s28 = sshll.u32 %s164_s19, 4  ;;  %s993_s28 = int_to_ptr.vmem [resolvable:$true] %s175_s28 }
  0x46   : > { %s165_s23 = sld [smem:[%s1249_s17 + %s1251_s20]]  ;;  %p983_p7 = pnand %p445_p11, %p202_p6 }
  0x47   : > { %s988_s9 = sld [smem:[#allocation6 + %s803_s13]]  ;;  %s161_s30 = scalar_lea.sflag [#allocation8], %s160_s1 }
  0x48   : > { %s1206_s0 = scalar_select %p983_p7, 1, 0 }
  0x49   : > { %s991_s11 = sld [smem:[#allocation6 + %s1243_s16]]  ;;  %p619_p5 = pneg %p972_p4 }
  0x4a   : > { %s622_s5 = scalar_lea.hbm %s1173_s3, 128 }
  0x4c   : > { %p440_p8 = scmp.gt.s32.totalorder %s165_s23, 0 }
  0x4e   : > { %s1253_s23 = smov (%p440_p8, %s165_s23), 0 }
  0x4f   : > { %s171_s17 = sadd.s32 %s803_s13, %s1253_s23 }
  0x50   : > { %s441_s15 = sshll.u32 %s171_s17, 6 }
  0x51   : > { %s173_s25 = scalar_lea.hbm %s1173_s3, %s441_s15 }
  0x52   : > { %s617_s27 = scalar_lea.hbm %s173_s25, 64  ;;  %p623_p8 = scmp.lt.s32.totalorder %s173_s25, %s1173_s3 }
  0x53   : > { %p618_p6 = scmp.ne.s32.totalorder %s173_s25, %s617_s27  ;;  %p624_p2 = scmp.lt.s32.totalorder %s622_s5, %s617_s27 }
  0x55   : > { %p620_p12 = pnand %p619_p5, %p618_p6  ;;  %p625_p0 = por %p624_p2, %p623_p8 }
  0x57   : > { %p621_p10 = pneg %p620_p12 }
  0x59   : > { %p626_p13 = pnand %p625_p0, %p621_p10 }
  0x5b   : > { %629 = shalt.err (!%p626_p13)
}
  0x5c   : > { %s630_s1 = scalar_lea.vmem %s993_s28, 64  ;;  %s812_s17 = smov [#allocation7]  }
  0x5d   : > { %p631_p11 = scmp.ne.s32.totalorder %s993_s28, %s630_s1  ;;  %s635_s15 = sshll.u32 %s812_s17, 4  ;;  %s636_s15 = int_to_ptr.vmem [resolvable:$false] %s635_s15 }
  0x5e   : > { %s637_s2 = scalar_lea.vmem %s636_s15, 128  ;;  %p638_p12 = scmp.lt.s32.totalorder %s993_s28, %s636_s15 }
  0x5f   : > { %p633_p9 = pnand %p631_p11, %p619_p5  ;;  %p639_p3 = scmp.lt.s32.totalorder %s637_s2, %s630_s1 }
  0x61   : > { %p634_p6 = pneg %p633_p9  ;;  %p640_p7 = por %p639_p3, %p638_p12 }
  0x63   : > { %p641_p1 = pnand %p640_p7, %p634_p6 }
  0x65   : > { %644 = shalt.err (!%p641_p1)
}
  0x66   : > { %473 = dma.hbm_to_vmem [thread:$0]  (!%p972_p4), %s173_s25, 64, %s993_s28, %s161_s30  }
  0x67   : > { %p1207_p1 = scmp.gt.s32.totalorder %s988_s9, 0  ;;  %p1208_p3 = scmp.gt.s32.totalorder %s991_s11, 0 }
  0x68   : > { %p1209_p9 = scmp.eq.s32.totalorder %s807_s14, 0  ;;  %p1210_p10 = scmp.ne.s32.totalorder %s783_s8, %s779_s7 }
  0x69   : > { %s1255_s9 = smov (%p1207_p1, %s988_s9), 0  ;;  %s1257_s11 = smov (%p1208_p3, %s991_s11), 0 }
  0x6a   : > { %p106_p13 = por %p1210_p10, %p1209_p9  ;;  %p1211_p5 = scmp.ne.s32.totalorder %s1197_s22, 0 }
  0x6b   : > { %p1212_p7 = scmp.ne.s32.totalorder %s779_s7, %s775_s6  ;;  %s93_s16 = ssub.s32 %s1255_s9, %s1257_s11 }
  0x6c   : > { %s94_s26 = sor.u32 %s93_s16, %s927_s21  ;;  %s97_s27 = sadd.s32 1, %s783_s8 }
  0x6d   : > { %p1035_p0 = por %p1212_p7, %p1211_p5  ;;  %p95_p2 = scmp.eq.s32.totalorder %s94_s26, 0 }
  0x6e   : > { %s182_s18 = sand.u32 1, %s783_s8   ;;  %p1214_p4 = scmp.lt.s32.totalorder %s807_s14, 2 }
  0x6f   : > { %s1213_s5 = scalar_select %p1035_p0, 1, 0 }
  0x70   : > { %s461_s30 = scalar_select %p106_p13, [#allocation6], [#allocation14] }
  0x71   : > { %s1043_s25 = scalar_select %p95_p2, %s783_s8, %s97_s27  }
  0x72   : > { %s462_s28 = scalar_select %p106_p13, %s803_s13, 0 }
  0x73   : > { %s1259_s30 = smov (!%p1214_p4, %s461_s30), [#allocation16]  ;;  %p1215_p11 = pmov %p1214_p4 }
  0x74   : > { %p1216_p8 = pmov %p1214_p4  ;;  %s442_s21 = sshll.u32 %s182_s18, 2 }
  0x75   : > { %s1261_s28 = smov (!%p1215_p11, %s462_s28), 0  ;;  %s186_s22 = scalar_lea.vmem [#allocation10], %s442_s21 }
  0x76   : > { %p1052_p6 = pnand %p1216_p8, %p106_p13  ;;  %s187_s11 = sld [smem:[%s1259_s30 + %s1261_s28]] }
  0x77   : > { %s197_s9 = sshll.u32 %s186_s22, 4  ;;  %s183_s15 = scalar_lea.sflag [#allocation11], %s182_s18  ;;  %s1057_s9 = int_to_ptr.vmem [resolvable:$true] %s197_s9 }
  0x78   : > { %p647_p3 = pneg %p1052_p6  ;;  %s650_s27 = scalar_lea.hbm %s1174_s4, 128 }
  0x7c   : > { %p443_p12 = scmp.gt.s32.totalorder %s187_s11, 0 }
  0x7e   : > { %s1263_s11 = smov (%p443_p12, %s187_s11), 0 }
  0x7f   : > { %s193_s20 = sadd.s32 %s803_s13, %s1263_s11 }
  0x80   : > { %s444_s19 = sshll.u32 %s193_s20, 6 }
  0x81   : > { %s195_s17 = scalar_lea.hbm %s1174_s4, %s444_s19 }
  0x82   : > { %s645_s2 = scalar_lea.hbm %s195_s17, 64  ;;  %p651_p13 = scmp.lt.s32.totalorder %s195_s17, %s1174_s4 }
  0x83   : > { %p646_p1 = scmp.ne.s32.totalorder %s195_s17, %s645_s2  ;;  %p652_p5 = scmp.lt.s32.totalorder %s650_s27, %s645_s2 }
  0x85   : > { %p648_p9 = pnand %p647_p3, %p646_p1  ;;  %p653_p7 = por %p652_p5, %p651_p13 }
  0x87   : > { %p649_p10 = pneg %p648_p9 }
  0x89   : > { %p654_p2 = pnand %p653_p7, %p649_p10 }
  0x8b   : > { %657 = shalt.err (!%p654_p2)
}
  0x8c   : > { %s658_s18 = scalar_lea.vmem %s1057_s9, 64  ;;  %s813_s11 = smov [#allocation10]  }
  0x8d   : > { %p659_p4 = scmp.ne.s32.totalorder %s1057_s9, %s658_s18  ;;  %s663_s21 = sshll.u32 %s813_s11, 4  ;;  %s664_s21 = int_to_ptr.vmem [resolvable:$false] %s663_s21 }
  0x8e   : > { %s665_s22 = scalar_lea.vmem %s664_s21, 128  ;;  %p666_p12 = scmp.lt.s32.totalorder %s1057_s9, %s664_s21 }
  0x8f   : > { %p661_p11 = pnand %p659_p4, %p647_p3  ;;  %p667_p1 = scmp.lt.s32.totalorder %s665_s22, %s658_s18 }
  0x91   : > { %p662_p8 = pneg %p661_p11  ;;  %p668_p9 = por %p667_p1, %p666_p12 }
  0x93   : > { %p669_p0 = pnand %p668_p9, %p662_p8 }
  0x95   : > { %672 = shalt.err (!%p669_p0)
}
  0x96   : > { %478 = dma.hbm_to_vmem [thread:$0]  (!%p1052_p6), %s195_s17, 64, %s1057_s9, %s183_s15  }
  0x97   : > { %p1218_p10 = scmp.ne.s32.totalorder %s1206_s0, 0 }
  0x98   : > { %s208_s20 = sand.u32 (!%p1218_p10), 1, %s791_s10   ;;  %p1219_p3 = scmp.ne.s32.totalorder (!%p1218_p10), %s1198_s24, 0 }
  0x99   : > { %206 = sbr.rel (%p1218_p10) target bundleno = 428 (0x1ac), region = 28  ;;  %s1079_s19 = sshll.u32 (!%p1218_p10), %s208_s20, 2 }
  0x9a   : > { %s209_s23 = scalar_lea.sflag (!%p1218_p10), [#allocation8], %s208_s20  ;;  %s212_s1 = scalar_lea.vmem (!%p1218_p10), [#allocation7], %s1079_s19 }
  0x9e   : > { %750 = dma.done.wait (%p1219_p3), %s209_s23, 64  }
  0x9f   : > { %752 = vsyncadd (%p1219_p3), %s209_s23, 4294967232  ;;  %s217_s6 = sand.u32 1, %s779_s7   ;;  %p1220_p0 = scmp.ne.s32.totalorder %s1213_s5, 0 }
  0xa0   : > { %s447_s9 = sshll.u32 %s217_s6, 2  ;;  %s218_s17 = scalar_lea.sflag [#allocation11], %s217_s6 }
  0xa1   : > { %s221_s0 = scalar_lea.vmem [#allocation10], %s447_s9 }
  0xa2   : > { %754 = dma.done.wait (%p1220_p0), %s218_s17, 64  }
  0xa3   : > { %756 = vsyncadd (%p1220_p0), %s218_s17, 4294967232  ;;  %s244_s15 = sand.u32 1, %s767_s29   ;;  %vm257_vm0 = vcmask 125952   ;;  %s259_s2 = sld [smem:[#allocation4 + %s799_s12]]  ;;  %v814_v0 = vmov 0.0  }
  0xa4   : > { %s1095_s24 = sshll.u32 %s244_s15, 3  ;;  %258 = vst.msk [vmem:[#allocation2] sm:$0xf] %vm257_vm0, %v814_v0 }
  0xa5   : > { %s246_s16 = scalar_lea.vmem [#allocation12], %s1095_s24 }
  0xa9   : > { %p450_p6 = scmp.lt.s32.totalorder %s259_s2, 16 }
  0xab   : > { %265 = sbr.rel (%p450_p6) target bundleno = 184 (0xb8), region = 44 }
  0xb0   : > { %v266_v1 = vld [vmem:[%s212_s1] sm:$0xf]  ;;  %v267_v2 = vld [vmem:[%s221_s0] sm:$0xf]  ;;  %v269_v4 = vld [vmem:[#allocation2] sm:$0xf] }
  0xb1   : > { %v268_v3 = vsub.f32 %v266_v1, %v267_v2 }
  0xb3   : > { %v270_v5 = vmul.f32 %v268_v3, %v268_v3 }
  0xb5   : > { %v271_v6 = vadd.f32 %v270_v5, %v269_v4 }
  0xb7   : > { %273 = vst.msk [vmem:[#allocation2] sm:$0xf] %vm257_vm0, %v271_v6 }
  0xb8 PF: > { %p451_p13 = scmp.gt.s32.totalorder %s259_s2, 0 }
  0xba   : > { %p276_p5 = pnand %p451_p13, %p450_p6 }
  0xbc   : > { %279 = sbr.rel (%p276_p5) target bundleno = 204 (0xcc), region = 48 }
  0xc1   : > { %v280_v7 = vld [vmem:[%s212_s1] sm:$0xf]  ;;  %v281_v8 = vld [vmem:[%s221_s0] sm:$0xf]  ;;  %v283_v9 = vlaneseq  ;;  %v287_v11 = vstv %s259_s2  ;;  %v290_v14 = vld [vmem:[#allocation2] sm:$0xf] }
  0xc2   : > { %v282_v10 = vsub.f32 %v280_v7, %v281_v8 }
  0xc3   : > { %v284_v12 = vand.u32 127, %v283_v9 }
  0xc5   : > { %vm288_vm1 = vcmp.lt.s32.totalorder %v284_v12, %v287_v11 }
  0xc6   : > { %v289_v13 = vsel %vm288_vm1, %v282_v10, 0.0 }
  0xc7   : > { %v291_v15 = vmul.f32 %v289_v13, %v289_v13 }
  0xc9   : > { %v292_v16 = vadd.f32 %v291_v15, %v290_v14 }
  0xcb   : > { %294 = vst.msk [vmem:[#allocation2] sm:$0xf] %vm257_vm0, %v292_v16 }
  0xcc PF: > { %s1221_s5 = sld [smem:[#allocation26_spill]]  ;;  %s453_s27 = sshll.u32 %s799_s12, 7 }
  0xcd   : > { %s310_s26 = sld [smem:[#allocation5 + %s799_s12]]  ;;  %s328_s30 = sshll.u32 %s246_s16, 4  ;;  %s329_s30 = int_to_ptr.vmem [resolvable:$true] %s328_s30 }
  0xce   : > { %s1222_s22 = sld [smem:[#allocation29_spill]]  ;;  %s315_s19 = scalar_lea.sflag [#allocation9], %s244_s15 }
  0xcf   : > { %s673_s23 = scalar_lea.vmem %s329_s30, 128  ;;  %s815_s12 = smov [#allocation12]  }
  0xd0   : > { %p674_p7 = scmp.ne.s32.totalorder %s329_s30, %s673_s23  ;;  %s677_s1 = sshll.u32 %s815_s12, 4  ;;  %s678_s1 = int_to_ptr.vmem [resolvable:$false] %s677_s1 }
  0xd1   : > { %s679_s6 = scalar_lea.vmem %s678_s1, 256  ;;  %p680_p8 = scmp.lt.s32.totalorder %s329_s30, %s678_s1 }
  0xd2   : > { %v298_v17 = vld [vmem:[#allocation2] sm:$0xf]  ;;  %p1223_p2 = scmp.ne.s32.totalorder %s1221_s5, 0  ;;  %p681_p12 = scmp.lt.s32.totalorder %s679_s6, %s673_s23 }
  0xd3   : > { %v300_v18 = vsel %vm257_vm0, %v298_v17, 0.0 }
  0xd4   : > { %301 = vadd.xlane.f32.xlu0 %v300_v18  ;;  %s1109_s20 = scalar_lea.hbm %s1222_s22, %s453_s27  ;;  %p675_p4 = pnand %p674_p7, %p1223_p2 }
  0xd5   : > { %p682_p1 = por %p681_p12, %p680_p8 }
  0xd6   : > { %p676_p11 = pneg %p675_p4 }
  0xd8   : > { %p683_p9 = pnand %p682_p1, %p676_p11 }
 0x15d   : > { %v302_v19 = vpop.xlane.xlu0 %301 }
 0x15e   : > { %v303_v20 = vrot.slane %v302_v19, 4 }
 0x160   : > { %v304_v21 = vadd.f32 %v303_v20, %v302_v19 }
 0x162   : > { %v305_v22 = vrot.slane %v304_v21, 2 }
 0x164   : > { %v306_v23 = vadd.f32 %v305_v22, %v304_v21 }
 0x166   : > { %v307_v24 = vrot.slane %v306_v23, 1 }
 0x168   : > { %v308_v25 = vadd.f32 %v307_v24, %v306_v23 }
 0x16a   : > { %456 = vpush %v308_v25 }
 0x19b   : > { %s457_s28 = spop %456 }
 0x19c   : > { %s311_s18 = smul.f32 %s457_s28, %s310_s26 }
 0x19e   : > { %v312_v26 = vstv %s311_s18 }
 0x19f   : > { %313 = vst [vmem:[%s246_s16] sm:$0xff] %v312_v26 }
 0x1a0   : > { %686 = shalt.err (!%p683_p9)
}
 0x1a1   : > { %s687_s9 = scalar_lea.hbm %s1109_s20, 128  ;;  %s691_s15 = scalar_lea.hbm %s1222_s22, 256 }
 0x1a2   : > { %p688_p10 = scmp.ne.s32.totalorder %s1109_s20, %s687_s9  ;;  %p692_p6 = scmp.lt.s32.totalorder %s1109_s20, %s1222_s22 }
 0x1a3   : > { %p693_p13 = scmp.lt.s32.totalorder %s691_s15, %s687_s9 }
 0x1a4   : > { %p689_p3 = pnand %p688_p10, %p1223_p2 }
 0x1a5   : > { %p694_p5 = por %p693_p13, %p692_p6 }
 0x1a6   : > { %p690_p0 = pneg %p689_p3 }
 0x1a8   : > { %p695_p7 = pnand %p694_p5, %p690_p0 }
 0x1aa   : > { %698 = shalt.err (!%p695_p7)
}
 0x1ab   : > { %466 = dma.vmem_to_hbm [thread:$0]  (%p1223_p2), %s329_s30, 128, %s1109_s20, %s315_s19  }
 0x1ac PF: > { %s1224_s16 = sld [smem:[#allocation21_spill]]  ;;  %p1227_p11 = scmp.ge.s32.totalorder %s807_s14, 2 }
 0x1ad   : > { %s1225_s26 = sld [smem:[#allocation27_spill]] }
 0x1b2   : > { %s340_s27 = sand.u32 1, %s1224_s16  }
 0x1b3   : > { %p1226_p4 = scmp.ne.s32.totalorder %s1225_s26, 0  ;;  %s341_s28 = scalar_lea.sflag [#allocation9], %s340_s27 }
 0x1b5   : > { %p480_p8 = pnand %p1227_p11, %p1226_p4 }
 0x1b7   : > { %p481_p12 = pneg %p480_p8 }
 0x1b9   : > { %758 = dma.done.wait (%p481_p12), %s341_s28, 128  }
 0x1ba   : > { %760 = vsyncadd (%p481_p12), %s341_s28, 4294967168  ;;  %s36_s14 = sadd.s32 1, %s807_s14   ;;  %s1228_s18 = sld [smem:[#allocation22_spill]] }
 0x1bb   : > { %p33_p1 = scmp.ge.s32.totalorder %s36_s14, 4   ;;  %s1229_s30 = sld [smem:[#allocation25_spill]] }
 0x1bc   : > { %s1230_s5 = sld [smem:[#allocation23_spill]]  ;;  %s1233_s2 = smov %s767_s29 }
 0x1bd   : > { %s1231_s11 = sld [smem:[#allocation28_spill]]  ;;  %s1235_s6 = smov %s779_s7 }
 0x1be   : > { %s1232_s21 = sld [smem:[#allocation24_spill]]  ;;  %s1236_s7 = smov %s783_s8 }
 0x1bf   : > { %s1237_s8 = smov %s1043_s25  ;;  %s1238_s9 = smov %s791_s10 }
 0x1c0   : > { %s1234_s29 = smov %s1228_s18  ;;  %s1240_s12 = smov %s803_s13 }
 0x1c1   :  { %35 = sbr.rel (!%p33_p1) target bundleno = 38 (0x26), region = 102 }
 0x1c2   : > { %s1239_s10 = smov %s1230_s5 }
 0x1c4   : > { %s1241_s13 = smov %s1232_s21 }
 0x1c6   :  { %346 = vsyncpa [#allocation8], 1 }
 0x1c7   :  { %348 = vsyncpa [#allocation8 + $0x1], 1 }
 0x1c8   :  { %349 = vsyncpa [#allocation11], 1 }
 0x1c9   :  { %351 = vsyncpa [#allocation11 + $0x1], 1 }
 0x1ca   :  { %352 = vsyncpa [#allocation9], 1 }
 0x1cb   :  { %354 = vsyncpa [#allocation9 + $0x1], 1 }

</bundles_post_ra>
